<compile_context>
chip_gen: v5e
topology: v5e:2x2
jax: 0.10.0
libtpu: 0.0.40
codegen_flags: <defaults>
</compile_context>

<pallas_src>
import jax
import jax.numpy as jnp
from jax.experimental import pallas as pl
from jax.experimental.pallas import tpu as pltpu

# ------------------------- config (mirrors `args`) -------------------------
BATCH = 4            # graphs / problems processed per pallas_call (amortizes dispatch)
N_NODES = 256        # number of node rows (multiple of 128 -> lane-dense)
FEATDIM = 64         # args.featdim (raw feature dim)
LATDIM = 32          # args.latdim
FC_LAYER = 2         # args.fc_layer
LN_EPS = 1e-5        # torch.nn.LayerNorm default eps


# ------------------------------ Pallas kernel ------------------------------
def fused_projector_mlp_kernel(featsT_ref, projT_ref, ws_ref, vecs_ref, o_ref):
    """Feat_Projector('uniform') projection + FC_LAYER fused MLP blocks.

    Transposed (lane-dense) layout: features on sublanes, nodes on lanes.
      featsT_ref: (FEATDIM, N)   bf16  raw node features, transposed (batch dim
                                        squeezed out by the BlockSpec)
      projT_ref : (LATDIM, FEATDIM)        bf16  projection matrix, transposed
      ws_ref    : (FC_LAYER, LATDIM, LATDIM) bf16 nn.Linear weights (out, in)
      vecs_ref  : (LATDIM, 3*FC_LAYER)     f32  columns [b_i, gamma_i, beta_i]
      o_ref     : (LATDIM, N)              f32  lane-dense output
    """
    # --- Feat_Projector ('uniform'): proj_embeds^T = P^T @ feats^T (MXU) -----
    x = jnp.dot(projT_ref[...], featsT_ref[...],
                preferred_element_type=jnp.float32)               # (D, N) f32
    vecs = vecs_ref[...]                                          # (D, 3L) f32

    # Hoisted: ones row used to push LayerNorm reductions onto the (idle) MXU.
    ones_row = jnp.ones((1, LATDIM), jnp.float32)                 # (1, D)
    inv_d = 1.0 / LATDIM

    # --- Expert MLP blocks, unrolled & fused (eval: dropout = identity) ------
    for i in range(FC_LAYER):
        w = ws_ref[i]                                             # (D, D) bf16
        b = vecs[:, 3 * i + 0:3 * i + 1]                          # (D, 1)
        gamma = vecs[:, 3 * i + 1:3 * i + 2]                      # (D, 1)
        beta = vecs[:, 3 * i + 2:3 * i + 3]                       # (D, 1)
        # nn.Linear: (x @ W^T)^T == W @ x^T; bf16 operands, f32 accumulation.
        h = jnp.dot(w, x.astype(jnp.bfloat16),
                    preferred_element_type=jnp.float32)           # (D, N)
        h = jnp.maximum(h + b, 0.0)                               # bias + ReLU
        y = h + x                                                 # residual
        # LayerNorm over feature axis (axis 0): reductions as MXU ones-row
        # matmuls (f32 operands -> multi-pass emulation, ~f32 accurate).
        mean = jnp.dot(ones_row, y,
                       preferred_element_type=jnp.float32) * inv_d   # (1, N)
        c = y - mean
        var = jnp.dot(ones_row, c * c,
                      preferred_element_type=jnp.float32) * inv_d    # (1, N)
        inv = jax.lax.rsqrt(var + LN_EPS)                         # EUP slot
        x = c * inv * gamma + beta

    o_ref[...] = x


def fused_forward_T(featsT, projT, ws, vecs):
    """Single pallas_call over a batch grid axis; lane-dense (B, D, N) output.

    Parameters (projT / ws / vecs) have batch-constant index_maps so they stay
    VMEM-resident across grid steps; only featsT / output are per-step DMAs.
    """
    bsz, featdim, n = featsT.shape
    d_out = projT.shape[0]
    return pl.pallas_call(
        fused_projector_mlp_kernel,
        out_shape=jax.ShapeDtypeStruct((bsz, d_out, n), jnp.float32),
        grid_spec=pltpu.PrefetchScalarGridSpec(
            num_scalar_prefetch=0,
            grid=(bsz,),  # one grid step per graph; whole graph VMEM-resident
            in_specs=[
                pl.BlockSpec((None, featdim, n), lambda b: (b, 0, 0)),  # feats^T
                pl.BlockSpec(projT.shape, lambda b: (0, 0)),            # P^T (resident)
                pl.BlockSpec(ws.shape, lambda b: (0, 0, 0)),            # stacked W (resident)
                pl.BlockSpec(vecs.shape, lambda b: (0, 0)),             # packed b/g/b (resident)
            ],
            out_specs=pl.BlockSpec((None, d_out, n), lambda b: (b, 0, 0)),
        ),
        compiler_params=pltpu.CompilerParams(
            # Batch axis is independent per step -> shard across TensorCores
            # on v7x. Once N_NODES >> 1-2K, additionally tile the N axis (see
            # scaling plan at the top of the file).
            dimension_semantics=("parallel",),
            # 32 MiB scoped VMEM: raises v5e's 16 MiB default; safe on all
            # generations (v7x physical ceiling is 64 MiB).
            vmem_limit_bytes=32 * 1024 * 1024,
        ),
    )(featsT, projT, ws, vecs)


@jax.jit
def feat_projector_forward(featsT, projT, ws, vecs):
    """Module forward.

    Returns embeds in lane-dense (BATCH, LATDIM, N_NODES) orientation — no
    trailing XLA transpose (per review); downstream consumers keep this layout.
    """
    return fused_forward_T(featsT, projT, ws, vecs)


# ------------------------------ params (init) -------------------------------
def init_params(key):
    """Parameters, pre-packed and pre-cast at init (no per-forward glue ops)."""
    # Feat_Projector 'uniform' projection: xavier_uniform on (featdim, latdim).
    # reset_parameters() re-draws it, so the effective output is feats @ P
    # (no flip) -- replicated here with a single fresh xavier draw.
    key, kp = jax.random.split(key)
    xav = (6.0 / (FEATDIM + LATDIM)) ** 0.5
    proj = jax.random.uniform(kp, (FEATDIM, LATDIM), jnp.float32, -xav, xav)

    # Expert MLP params: nn.Linear / nn.LayerNorm defaults.
    bound = LATDIM ** -0.5
    ws, cols, mlp_params = [], [], []
    for _ in range(FC_LAYER):
        key, kw, kb = jax.random.split(key, 3)
        w = jax.random.uniform(kw, (LATDIM, LATDIM), jnp.float32, -bound, bound)
        b = jax.random.uniform(kb, (LATDIM,), jnp.float32, -bound, bound)
        gamma = jnp.ones((LATDIM,), jnp.float32)
        beta = jnp.zeros((LATDIM,), jnp.float32)
        ws.append(w)
        cols += [b, gamma, beta]
        mlp_params.append((w, b, gamma, beta))

    packed = {
        # Matmul operands pre-cast to bf16 (MXU-native); bias/LN stay f32.
        "projT": jnp.asarray(proj.T).astype(jnp.bfloat16),        # (LATDIM, FEATDIM)
        "ws": jnp.stack(ws, axis=0).astype(jnp.bfloat16),         # (FC_LAYER, LATDIM, LATDIM)
        "vecs": jnp.stack(cols, axis=1),                          # (LATDIM, 3*FC_LAYER) f32
    }
    return packed, proj, mlp_params


# ------------------------------ reference (JAX) -----------------------------
def reference_forward(feats, proj, mlp_params):
    """Pure-JAX reference with the same bf16 matmul-operand quantization as the
    kernel (f32 accumulation / bias / LayerNorm), HIGHEST-precision dots."""
    hp = jax.lax.Precision.HIGHEST
    bf = lambda a: a.astype(jnp.bfloat16).astype(jnp.float32)
    x = jnp.dot(bf(feats), bf(proj), precision=hp)         # Feat_Projector 'uniform'
    for (w, b, gamma, beta) in mlp_params:                  # Expert MLP blocks
        h = jnp.maximum(jnp.dot(bf(x), bf(w).T, precision=hp) + b, 0.0)
        y = h + x
        mean = jnp.mean(y, axis=-1, keepdims=True)
        var = jnp.mean((y - mean) ** 2, axis=-1, keepdims=True)
        x = (y - mean) / jnp.sqrt(var + LN_EPS) * gamma + beta
    return x


# ------------------------------------ main ----------------------------------
if __name__ == "__main__":
    key = jax.random.PRNGKey(0)
    key, kf = jax.random.split(key)

    # Raw node features for BATCH graphs (what Feat_Projector receives).
    feats = jax.random.normal(kf, (BATCH, N_NODES, FEATDIM), jnp.float32)

    packed, proj, mlp_params = init_params(key)

    # One-time layout transform + cast at init: lane-dense bf16 (B, F, N) slab.
    featsT = jnp.transpose(feats, (0, 2, 1)).astype(jnp.bfloat16)

    out = feat_projector_forward(featsT, packed["projT"],
                                 packed["ws"], packed["vecs"])
    out = jax.block_until_ready(out)
    assert out.shape == (BATCH, LATDIM, N_NODES)

    # Verification only: transpose reference into the kernel's lane-dense layout.
    ref = reference_forward(feats, proj, mlp_params)        # (B, N, D)
    ref_T = jnp.transpose(ref, (0, 2, 1))                   # (B, D, N)
    assert jnp.allclose(out, ref_T, atol=1e-3, rtol=1e-3), "mismatch vs reference"

    print("KERNEL_OK")
</pallas_src>

<mosaic_0001>
module attributes {stable_mosaic.version = 11 : i64} {
  func.func @fused_projector_mlp_kernel(%arg0: i32, %arg1: memref<1x64x256xbf16, #tpu.memory_space<vmem>>, %arg2: memref<32x64xbf16, #tpu.memory_space<vmem>>, %arg3: memref<2x32x32xbf16, #tpu.memory_space<vmem>>, %arg4: memref<32x6xf32, #tpu.memory_space<vmem>>, %arg5: memref<1x32x256xf32, #tpu.memory_space<vmem>>) attributes {dimension_semantics = [#tpu.dimension_semantics<parallel>], iteration_bounds = array<i64: 4>, scalar_prefetch = 0 : i64, scratch_operands = 0 : i64, tpu.core_type = #tpu.core_type<tc>, window_params = [{transform_indices = @transform_0, window_bounds = array<i64: 1, 64, 256>}, {pipeline_mode = #tpu.pipeline_mode<synchronous>, transform_indices = @transform_1, window_bounds = array<i64: 32, 64>}, {pipeline_mode = #tpu.pipeline_mode<synchronous>, transform_indices = @transform_2, window_bounds = array<i64: 2, 32, 32>}, {pipeline_mode = #tpu.pipeline_mode<synchronous>, transform_indices = @transform_3, window_bounds = array<i64: 32, 6>}, {transform_indices = @transform_4, window_bounds = array<i64: 1, 32, 256>}]} {
    %c0 = arith.constant 0 : index
    %c0_0 = arith.constant 0 : index
    %0 = vector.load %arg2[%c0, %c0_0] : memref<32x64xbf16, #tpu.memory_space<vmem>>, vector<32x64xbf16>
    %c0_1 = arith.constant 0 : index
    %c0_2 = arith.constant 0 : index
    %c0_3 = arith.constant 0 : index
    %1 = vector.load %arg1[%c0_1, %c0_2, %c0_3] : memref<1x64x256xbf16, #tpu.memory_space<vmem>>, vector<1x64x256xbf16>
    %2 = vector.shape_cast %1 : vector<1x64x256xbf16> to vector<64x256xbf16>
    %cst = arith.constant dense<0.000000e+00> : vector<32x256xf32>
    %3 = tpu.matmul %0, %2, %cst {dimension_numbers = #tpu.dot_dimension_numbers<[1], [0], [0], [1], [0, 0, 1, 1], [], []>} : vector<32x64xbf16>, vector<64x256xbf16>, vector<32x256xf32> -> vector<32x256xf32>
    %c0_4 = arith.constant 0 : index
    %c0_5 = arith.constant 0 : index
    %4 = vector.load %arg4[%c0_4, %c0_5] : memref<32x6xf32, #tpu.memory_space<vmem>>, vector<32x6xf32>
    %cst_6 = arith.constant 1.000000e+00 : f32
    %5 = vector.broadcast %cst_6 : f32 to vector<1x32xf32>
    %c0_7 = arith.constant 0 : index
    %c0_8 = arith.constant 0 : index
    %c0_9 = arith.constant 0 : index
    %6 = vector.load %arg3[%c0_7, %c0_8, %c0_9] : memref<2x32x32xbf16, #tpu.memory_space<vmem>>, vector<1x32x32xbf16>
    %7 = vector.shape_cast %6 : vector<1x32x32xbf16> to vector<32x32xbf16>
    %8 = vector.extract_strided_slice %4 {offsets = [0, 0], sizes = [32, 1], strides = [1, 1]} : vector<32x6xf32> to vector<32x1xf32>
    %9 = vector.extract_strided_slice %4 {offsets = [0, 1], sizes = [32, 1], strides = [1, 1]} : vector<32x6xf32> to vector<32x1xf32>
    %10 = vector.extract_strided_slice %4 {offsets = [0, 2], sizes = [32, 1], strides = [1, 1]} : vector<32x6xf32> to vector<32x1xf32>
    %11 = arith.truncf %3 : vector<32x256xf32> to vector<32x256xbf16>
    %cst_10 = arith.constant dense<0.000000e+00> : vector<32x256xf32>
    %12 = tpu.matmul %7, %11, %cst_10 {dimension_numbers = #tpu.dot_dimension_numbers<[1], [0], [0], [1], [0, 0, 1, 1], [], []>} : vector<32x32xbf16>, vector<32x256xbf16>, vector<32x256xf32> -> vector<32x256xf32>
    %13 = vector.broadcast %8 : vector<32x1xf32> to vector<32x256xf32>
    %14 = arith.addf %12, %13 : vector<32x256xf32>
    %cst_11 = arith.constant 0.000000e+00 : f32
    %15 = vector.broadcast %cst_11 : f32 to vector<32x256xf32>
    %16 = arith.maximumf %14, %15 : vector<32x256xf32>
    %17 = arith.addf %16, %3 : vector<32x256xf32>
    %cst_12 = arith.constant dense<0.000000e+00> : vector<1x256xf32>
    %18 = tpu.matmul %5, %17, %cst_12 {dimension_numbers = #tpu.dot_dimension_numbers<[1], [0], [0], [1], [0, 0, 1, 1], [], []>} : vector<1x32xf32>, vector<32x256xf32>, vector<1x256xf32> -> vector<1x256xf32>
    %cst_13 = arith.constant 3.125000e-02 : f32
    %19 = vector.broadcast %cst_13 : f32 to vector<1x256xf32>
    %20 = arith.mulf %18, %19 : vector<1x256xf32>
    %21 = vector.broadcast %20 : vector<1x256xf32> to vector<32x256xf32>
    %22 = arith.subf %17, %21 : vector<32x256xf32>
    %23 = arith.mulf %22, %22 : vector<32x256xf32>
    %cst_14 = arith.constant dense<0.000000e+00> : vector<1x256xf32>
    %24 = tpu.matmul %5, %23, %cst_14 {dimension_numbers = #tpu.dot_dimension_numbers<[1], [0], [0], [1], [0, 0, 1, 1], [], []>} : vector<1x32xf32>, vector<32x256xf32>, vector<1x256xf32> -> vector<1x256xf32>
    %cst_15 = arith.constant 3.125000e-02 : f32
    %25 = vector.broadcast %cst_15 : f32 to vector<1x256xf32>
    %26 = arith.mulf %24, %25 : vector<1x256xf32>
    %cst_16 = arith.constant 9.99999974E-6 : f32
    %27 = vector.broadcast %cst_16 : f32 to vector<1x256xf32>
    %28 = arith.addf %26, %27 : vector<1x256xf32>
    %29 = math.rsqrt %28 : vector<1x256xf32>
    %30 = vector.broadcast %29 : vector<1x256xf32> to vector<32x256xf32>
    %31 = arith.mulf %22, %30 : vector<32x256xf32>
    %32 = vector.broadcast %9 : vector<32x1xf32> to vector<32x256xf32>
    %33 = arith.mulf %31, %32 : vector<32x256xf32>
    %34 = vector.broadcast %10 : vector<32x1xf32> to vector<32x256xf32>
    %35 = arith.addf %33, %34 : vector<32x256xf32>
    %c1 = arith.constant 1 : index
    %c0_17 = arith.constant 0 : index
    %c0_18 = arith.constant 0 : index
    %36 = vector.load %arg3[%c1, %c0_17, %c0_18] : memref<2x32x32xbf16, #tpu.memory_space<vmem>>, vector<1x32x32xbf16>
    %37 = vector.shape_cast %36 : vector<1x32x32xbf16> to vector<32x32xbf16>
    %38 = vector.extract_strided_slice %4 {offsets = [0, 3], sizes = [32, 1], strides = [1, 1]} : vector<32x6xf32> to vector<32x1xf32>
    %39 = vector.extract_strided_slice %4 {offsets = [0, 4], sizes = [32, 1], strides = [1, 1]} : vector<32x6xf32> to vector<32x1xf32>
    %40 = vector.extract_strided_slice %4 {offsets = [0, 5], sizes = [32, 1], strides = [1, 1]} : vector<32x6xf32> to vector<32x1xf32>
    %41 = arith.truncf %35 : vector<32x256xf32> to vector<32x256xbf16>
    %cst_19 = arith.constant dense<0.000000e+00> : vector<32x256xf32>
    %42 = tpu.matmul %37, %41, %cst_19 {dimension_numbers = #tpu.dot_dimension_numbers<[1], [0], [0], [1], [0, 0, 1, 1], [], []>} : vector<32x32xbf16>, vector<32x256xbf16>, vector<32x256xf32> -> vector<32x256xf32>
    %43 = vector.broadcast %38 : vector<32x1xf32> to vector<32x256xf32>
    %44 = arith.addf %42, %43 : vector<32x256xf32>
    %cst_20 = arith.constant 0.000000e+00 : f32
    %45 = vector.broadcast %cst_20 : f32 to vector<32x256xf32>
    %46 = arith.maximumf %44, %45 : vector<32x256xf32>
    %47 = arith.addf %46, %35 : vector<32x256xf32>
    %cst_21 = arith.constant dense<0.000000e+00> : vector<1x256xf32>
    %48 = tpu.matmul %5, %47, %cst_21 {dimension_numbers = #tpu.dot_dimension_numbers<[1], [0], [0], [1], [0, 0, 1, 1], [], []>} : vector<1x32xf32>, vector<32x256xf32>, vector<1x256xf32> -> vector<1x256xf32>
    %cst_22 = arith.constant 3.125000e-02 : f32
    %49 = vector.broadcast %cst_22 : f32 to vector<1x256xf32>
    %50 = arith.mulf %48, %49 : vector<1x256xf32>
    %51 = vector.broadcast %50 : vector<1x256xf32> to vector<32x256xf32>
    %52 = arith.subf %47, %51 : vector<32x256xf32>
    %53 = arith.mulf %52, %52 : vector<32x256xf32>
    %cst_23 = arith.constant dense<0.000000e+00> : vector<1x256xf32>
    %54 = tpu.matmul %5, %53, %cst_23 {dimension_numbers = #tpu.dot_dimension_numbers<[1], [0], [0], [1], [0, 0, 1, 1], [], []>} : vector<1x32xf32>, vector<32x256xf32>, vector<1x256xf32> -> vector<1x256xf32>
    %cst_24 = arith.constant 3.125000e-02 : f32
    %55 = vector.broadcast %cst_24 : f32 to vector<1x256xf32>
    %56 = arith.mulf %54, %55 : vector<1x256xf32>
    %cst_25 = arith.constant 9.99999974E-6 : f32
    %57 = vector.broadcast %cst_25 : f32 to vector<1x256xf32>
    %58 = arith.addf %56, %57 : vector<1x256xf32>
    %59 = math.rsqrt %58 : vector<1x256xf32>
    %60 = vector.broadcast %59 : vector<1x256xf32> to vector<32x256xf32>
    %61 = arith.mulf %52, %60 : vector<32x256xf32>
    %62 = vector.broadcast %39 : vector<32x1xf32> to vector<32x256xf32>
    %63 = arith.mulf %61, %62 : vector<32x256xf32>
    %64 = vector.broadcast %40 : vector<32x1xf32> to vector<32x256xf32>
    %65 = arith.addf %63, %64 : vector<32x256xf32>
    %c0_26 = arith.constant 0 : index
    %c0_27 = arith.constant 0 : index
    %c0_28 = arith.constant 0 : index
    %66 = vector.load %arg5[%c0_26, %c0_27, %c0_28] : memref<1x32x256xf32, #tpu.memory_space<vmem>>, vector<1x32x256xf32>
    %67 = vector.shape_cast %66 : vector<1x32x256xf32> to vector<32x256xf32>
    %68 = vector.shape_cast %65 : vector<32x256xf32> to vector<1x32x256xf32>
    tpu.vector_store %arg5[%c0_26, %c0_27, %c0_28], %68 {strides = array<i32>} : memref<1x32x256xf32, #tpu.memory_space<vmem>>, vector<1x32x256xf32>,
    return
  }
  func.func @transform_0(%arg0: i32) -> (i32, i32, i32) {
    %c0_i32 = arith.constant 0 : i32
    %c0_i32_0 = arith.constant 0 : i32
    %c0_i32_1 = arith.constant 0 : i32
    return %arg0, %c0_i32, %c0_i32_0 : i32, i32, i32
  }
  func.func @transform_1(%arg0: i32) -> (i32, i32) {
    %c0_i32 = arith.constant 0 : i32
    %c0_i32_0 = arith.constant 0 : i32
    %c0_i32_1 = arith.constant 0 : i32
    return %c0_i32, %c0_i32_0 : i32, i32
  }
  func.func @transform_2(%arg0: i32) -> (i32, i32, i32) {
    %c0_i32 = arith.constant 0 : i32
    %c0_i32_0 = arith.constant 0 : i32
    %c0_i32_1 = arith.constant 0 : i32
    %c0_i32_2 = arith.constant 0 : i32
    return %c0_i32, %c0_i32_0, %c0_i32_1 : i32, i32, i32
  }
  func.func @transform_3(%arg0: i32) -> (i32, i32) {
    %c0_i32 = arith.constant 0 : i32
    %c0_i32_0 = arith.constant 0 : i32
    %c0_i32_1 = arith.constant 0 : i32
    return %c0_i32, %c0_i32_0 : i32, i32
  }
  func.func @transform_4(%arg0: i32) -> (i32, i32, i32) {
    %c0_i32 = arith.constant 0 : i32
    %c0_i32_0 = arith.constant 0 : i32
    %c0_i32_1 = arith.constant 0 : i32
    return %arg0, %c0_i32, %c0_i32_0 : i32, i32, i32
  }
}

</mosaic_0001>

<bundles_post_ra>
// kernel: feat_projector_forward.1
= control target key start
LH: loop header
LB: loop body
LE: loop exit
PB: predicated region body
PF: predicated region fallthrough
CT: control target
= control target key end

     0   :  { %9 = vsyncpa [#allocation3], 0  ;;  %s1686_s0 = inlined_call_operand.hbm [shape: bf16[4,64,256], index: 0, kind: input, shape index: {}]   ;;  %s1687_s1 = inlined_call_operand.hbm [shape: bf16[32,64], index: 1, kind: input, shape index: {}]   ;;  %s1688_s2 = inlined_call_operand.vmem [shape: bf16[2,32,32], index: 2, kind: input, shape index: {}]   ;;  %s1689_s3 = inlined_call_operand.vmem [shape: f32[32,6], index: 3, kind: input, shape index: {}]   ;;  %s1690_s4 = inlined_call_operand.hbm [shape: f32[4,32,256], index: 4, kind: output, shape index: {}]  }
   0x1   :  { %11 = vsyncpa [#allocation3 + $0x1], 0 }
   0x2   :  { %12 = vsyncpa [#allocation6], 0 }
   0x3   :  { %13 = vsyncpa [#allocation4], 0 }
   0x4   :  { %15 = vsyncpa [#allocation4 + $0x1], 0  ;;  %s1392_s15 = smov 0   ;;  %s1394_s16 = smov 0  }
   0x5   :  { %s1396_s17 = smov 0   ;;  %s1398_s18 = smov 0  }
   0x6 LB: > { %s1413_s19 = sadd.s32 4294967295, %s1351_s18   ;;  %s1015_s20 = sadd.s32 4294967294, %s1351_s18   ;;  %s1351_s18 = sphi %s1398_s18, %s1699_s18   ;;  %s1347_s17 = sphi %s1396_s17, %s1698_s17   ;;  %s1343_s16 = sphi %s1394_s16, %s1697_s16   ;;  %s1339_s15 = sphi %s1392_s15, %s1696_s15  }
   0x7   : > { %p41_p0 = scmp.ne.s32.totalorder %s1343_s16, %s1339_s15  ;;  %p42_p1 = scmp.eq.s32.totalorder %s1413_s19, 0 }
   0x8   : > { %p128_p2 = scmp.eq.s32.totalorder %s1413_s19, 3  ;;  %p134_p3 = scmp.eq.s32.totalorder %s1015_s20, 3 }
   0x9   : > { %p1422_p4 = por %p42_p1, %p41_p0  ;;  %p1016_p5 = scmp.ge.s32.totalorder %s1351_s18, 1 }
   0xa   : > { %p1427_p6 = por %p134_p3, %p41_p0  ;;  %p141_p7 = scmp.lt.s32.totalorder %s1351_s18, 5 }
   0xb   : > { %s152_s25 = sshll.u32 %s1687_s1, 4  ;;  %s1353_s27 = smov [#allocation5]   ;;  %s153_s25 = int_to_ptr.hbm [resolvable:$true] %s152_s25 }
   0xc   : > { %p1435_p8 = pnand %p1016_p5, %p141_p7  ;;  %s154_s28 = sshll.u32 %s1353_s27, 4  ;;  %s155_s28 = int_to_ptr.vmem [resolvable:$true] %s154_s28 }
   0xd   : > { %s1444_s29 = sadd.s32 1, %s1351_s18   ;;  %s1354_s30 = smov 64  }
   0xe   : > { %p1135_p9 = pneg %p1435_p8  ;;  %s1355_s5 = smov 4  }
   0xf   : > { %s25_s6 = ssub.s32 %s1351_s18, %s1444_s29  ;;  %s28_s7 = sadd.s32 1, %s1347_s17 }
  0x10   : > { %p1136_p10 = pnand %p1135_p9, %p42_p1  ;;  %p26_p11 = scmp.eq.s32.totalorder %s25_s6, 0 }
  0x11   : > { %p35_p12 = scmp.ne.s32.totalorder %s1347_s17, %s1343_s16  ;;  %p36_p13 = scmp.eq.s32.totalorder %s1351_s18, 0 }
  0x12   : > { %1138 = dma.hbm_to_vmem [thread:$0]  (!%p1136_p10), %s153_s25, 256, %s155_s28, [#allocation6], %s1354_s30, %s1354_s30, %s1355_s5  }
  0x13   : > { %p1148_p0 = scmp.lt.s32.totalorder %s1351_s18, 4  ;;  %p37_p3 = por %p36_p13, %p35_p12 }
  0x14   : > { %s1454_s8 = scalar_select %p26_p11, %s1347_s17, %s28_s7  }
  0x15   : > { %p1458_p5 = por %p128_p2, %p35_p12  ;;  %s174_s10 = sand.u32 1, %s1347_s17  }
  0x16   : > { %s1111_s11 = sshll.u32 %s1351_s18, 6  ;;  %s1019_s12 = sshll.u32 %s174_s10, 6 }
  0x17   : > { %s183_s20 = scalar_lea.hbm %s1686_s0, %s1111_s11  ;;  %s178_s24 = scalar_lea.vmem [#allocation2], %s1019_s12 }
  0x18   : > { %s184_s23 = sshll.u32 %s183_s20, 4  ;;  %s186_s25 = sshll.u32 %s178_s24, 4  ;;  %s185_s23 = int_to_ptr.hbm [resolvable:$true] %s184_s23  ;;  %s187_s25 = int_to_ptr.vmem [resolvable:$true] %s186_s25 }
  0x19   : > { %p1469_p7 = pnand %p1148_p0, %p37_p3  ;;  %s175_s28 = scalar_lea.sflag [#allocation3], %s174_s10 }
  0x1a   : > { %s1251_s30 = sshra.s32 %s185_s23, 4  ;;  %s1258_s11 = scalar_lea.hbm %s1686_s0, 256  ;;  %s1252_s30 = int_to_ptr.hbm [resolvable:$true] %s1251_s30 }
  0x1b   : > { %s1253_s5 = scalar_lea.hbm %s1252_s30, 64  ;;  %p1255_p9 = pneg %p1469_p7 }
  0x1c   : > { %p1254_p2 = scmp.ne.s32.totalorder %s1252_s30, %s1253_s5  ;;  %p1259_p12 = scmp.lt.s32.totalorder %s1252_s30, %s1686_s0 }
  0x1d   : > { %p1260_p13 = scmp.lt.s32.totalorder %s1258_s11, %s1253_s5 }
  0x1e   : > { %p1256_p10 = pnand %p1255_p9, %p1254_p2 }
  0x1f   : > { %p1261_p0 = por %p1260_p13, %p1259_p12 }
  0x20   : > { %p1257_p11 = pneg %p1256_p10 }
  0x22   : > { %p1262_p3 = pnand %p1261_p0, %p1257_p11 }
  0x24   : > { %1265 = shalt.err (!%p1262_p3)
}
  0x25   : > { %s1356_s10 = smov 128   ;;  %s1357_s14 = smov 8  }
  0x26   : > { %1142 = dma.hbm_to_vmem [thread:$0]  (!%p1469_p7), %s185_s23, 1024, %s187_s25, %s175_s28, %s1356_s10, %s1356_s10, %s1357_s14  }
  0x27   : > { %198 = sbr.rel (%p1435_p8) target bundleno = 1182 (0x49e), region = 36  ;;  %s1486_s20 = sand.u32 (!%p1435_p8), 1, %s1343_s16  }
  0x28   : > { %s1023_s24 = sshll.u32 (!%p1435_p8), %s1486_s20, 6  ;;  %s201_s30 = scalar_lea.sflag (!%p1435_p8), [#allocation3], %s1486_s20 }
  0x29   : > { %s204_s5 = scalar_lea.vmem (!%p1435_p8), [#allocation2], %s1023_s24 }
  0x2c   : > { %1326 = dma.done.wait (%p1422_p4), %s201_s30, 1024  }
  0x2d   : > { %1328 = vsyncadd (%p1422_p4), %s201_s30, 4294966272 }
  0x2e   : > { %1330 = dma.done.wait (%p42_p1), [#allocation6], 256  }
  0x2f   : > { %1332 = vsyncadd (%p42_p1), [#allocation6], 4294967040  ;;  %v1060_v0 = vld [vmem:[%s204_s5 + $0x30] sm:$0xf]  ;;  %v1121_v1 = vld [vmem:[%s204_s5 + $0x34] sm:$0xf0] }
  0x30   : > { %v1120_v2 = vld [vmem:[%s204_s5 + $0x34] sm:$0xf]  ;;  %v1061_v3 = vor.u32 %v1121_v1, %v1060_v0  ;;  %v1062_v4 = vld [vmem:[%s204_s5 + $0x38] sm:$0xf0]  ;;  %v1052_v5 = vld [vmem:[%s204_s5 + $0x20] sm:$0xf] }
  0x31   : > { %v1119_v6 = vld [vmem:[%s204_s5 + $0x24] sm:$0xf0]  ;;  %v1065_v7 = vor.u32 %v1120_v2, %v1062_v4  ;;  %v1118_v8 = vld [vmem:[%s204_s5 + $0x24] sm:$0xf]  ;;  %v1054_v9 = vld [vmem:[%s204_s5 + $0x28] sm:$0xf0] }
  0x32   : > { %309 = vmatpush.bf16.msra.mxu0 %v1061_v3  ;;  %v1053_v10 = vor.u32 %v1119_v6, %v1052_v5  ;;  %v1057_v11 = vor.u32 %v1118_v8, %v1054_v9  ;;  %v1044_v12 = vld [vmem:[%s204_s5 + $0x10] sm:$0xf]  ;;  %v1117_v13 = vld [vmem:[%s204_s5 + $0x14] sm:$0xf0]  ;;  %v1116_v14 = vld [vmem:[%s204_s5 + $0x14] sm:$0xf] }
  0x33   : > { %328 = vmatpush.bf16.msra.mxu1 %v1065_v7  ;;  %v1046_v15 = vld [vmem:[%s204_s5 + $0x18] sm:$0xf0]  ;;  %v1045_v16 = vor.u32 %v1117_v13, %v1044_v12  ;;  %v1036_v18 = vld [vmem:[%s204_s5] sm:$0xf]  ;;  %v1115_v19 = vld [vmem:[%s204_s5 + $0x4] sm:$0xf0] }
  0x34   : > { %v1049_v17 = vor.u32 %v1116_v14, %v1046_v15  ;;  %v1114_v20 = vld [vmem:[%s204_s5 + $0x4] sm:$0xf]  ;;  %v1038_v21 = vld [vmem:[%s204_s5 + $0x8] sm:$0xf0]  ;;  %v1037_v22 = vor.u32 %v1115_v19, %v1036_v18  ;;  %vm298_vm0 = vcmask 523264   ;;  %v1358_v29 = vmov 0  }
  0x35   : > { %v1041_v23 = vor.u32 %v1114_v20, %v1038_v21  ;;  %v1112_v24 = vld [vmem:[#allocation5] sm:$0xff]  ;;  %v1113_v25 = vld [vmem:[#allocation5 + $0x8] sm:$0xff]  ;;  %1198 = vset.pattern.permute.xlu1 %v1358_v29  ;;  %1197 = vset.pattern.permute.xlu0 %v1358_v29  ;;  %v1520_v35 = vld [vmem:[%s1689_s3 + $0x18] sm:$0xff]  ;;  %vm385_vm1 = vcmask 261120   ;;  %v1360_v18 = vmov 2   ;;  %v1361_v19 = vmov 1  }
  0x36   : > { %310 = vmatpush.bf16.msra.mxu0 %v1053_v10  ;;  %v1507_v28 = vld [vmem:[%s1689_s3 + $0x8] sm:$0xff]  ;;  %v1515_v34 = vld [vmem:[%s1689_s3] sm:$0xff]  ;;  %372 = vperm.xlu0 %1197, %v1520_v35   ;;  %v1527_v39 = vld [vmem:[%s1689_s3 + $0x10] sm:$0xff]  ;;  %s1126_s26 = sshll.u32 %s1413_s19, 6  ;;  %s234_s28 = scalar_lea.vmem [#allocation7], %s1023_s24 }
  0x37   : > { %329 = vmatpush.bf16.msra.mxu1 %v1057_v11  ;;  %362 = vperm.xlu1 %1198, %v1507_v28   ;;  %v1122_v43 = vld [vmem:[%s1688_s2] sm:$0xff]  ;;  %v1123_v44 = vld [vmem:[%s1688_s2 + $0x8] sm:$0xff]  ;;  %s928_s27 = scalar_lea.hbm %s1690_s4, %s1126_s26  ;;  %s929_s19 = sshll.u32 %s234_s28, 4  ;;  %s930_s19 = int_to_ptr.vmem [resolvable:$true] %s929_s19 }
  0x38   : > { %1199 = vset.pattern.permute.xlu2 %v1361_v19  ;;  %s931_s6 = sshll.u32 %s928_s27, 4  ;;  %s917_s24 = scalar_lea.sflag [#allocation4], %s1486_s20  ;;  %s932_s6 = int_to_ptr.hbm [resolvable:$true] %s931_s6 }
  0x39   : > { %592 = vperm.xlu2 %1199, %v1527_v39   ;;  %s1295_s7 = sshra.s32 %s932_s6, 4  ;;  %s1301_s10 = scalar_lea.hbm %s1690_s4, 256  ;;  %s1296_s7 = int_to_ptr.hbm [resolvable:$true] %s1295_s7 }
  0x3a   : > { %311 = vmatpush.bf16.msra.mxu0 %v1045_v16  ;;  %s1297_s11 = scalar_lea.hbm %s1296_s7, 64  ;;  %p1302_p7 = scmp.lt.s32.totalorder %s1296_s7, %s1690_s4 }
  0x3b   : > { %330 = vmatpush.bf16.msra.mxu1 %v1049_v17  ;;  %v1359_v17 = vmov 1.0   ;;  %p1298_p1 = scmp.ne.s32.totalorder %s1296_s7, %s1297_s11  ;;  %p1303_p2 = scmp.lt.s32.totalorder %s1301_s10, %s1297_s11 }
  0x3d   : > { %p1299_p4 = pnand %p1298_p1, %p1458_p5  ;;  %p1304_p9 = por %p1303_p2, %p1302_p7 }
  0x3e   : > { %312 = vmatpush.bf16.msra.mxu0 %v1037_v22  ;;  %367 = vperm.xlu0 %1197, %v1527_v39  }
  0x3f   : > { %331 = vmatpush.bf16.msra.mxu1 %v1041_v23  ;;  %357 = vperm.xlu1 %1198, %v1515_v34   ;;  %p1300_p8 = pneg %p1299_p4 }
  0x41   : > { %1066 = vmatmul.msk.bf16.vlgmr.msra.gmra.mxu0 %vm298_vm0, %v1112_v24  ;;  %596 = vperm.xlu2 %1199, %v1520_v35   ;;  %p1305_p10 = pnand %p1304_p9, %p1300_p8 }
  0x42   : > { %1068 = vmatmul.msk.bf16.vlgmr.msra.gmra.mxu1 %vm298_vm0, %v1112_v24 }
  0x46   : > { %1200 = vset.pattern.permute.xlu0 %v1360_v18 }
  0x47   : > { %1201 = vset.pattern.permute.xlu1 %v1360_v18  ;;  %616 = vperm.xlu0 %1200, %v1527_v39  }
  0x48   : > { %620 = vperm.xlu1 %1201, %v1520_v35  }
  0x49   : > { %584 = vperm.xlu2 %1199, %v1515_v34  }
  0x4f   : > { %612 = vperm.xlu0 %1200, %v1507_v28  }
  0x50   : > { %1202 = vset.pattern.permute.xlu1 %v1361_v19 }
  0x51   : > { %1067 = vmatmul.msk.bf16.gmra.mxu0 %vm298_vm0, %v1113_v25  ;;  %588 = vperm.xlu1 %1202, %v1507_v28  }
  0x52   : > { %1069 = vmatmul.msk.bf16.gmra.mxu1 %vm298_vm0, %v1113_v25  ;;  %1203 = vset.pattern.permute.xlu2 %v1360_v18 }
  0x53   : > { %608 = vperm.xlu2 %1203, %v1515_v34  }
  0xa8   : > { %v373_v49 = vpop.permute.xlu0 %372 }
  0xa9   : > { %v363_v50 = vpop.permute.xlu1 %362 }
  0xb0   : > { %v368_v53 = vpop.permute.xlu0 %367 }
  0xb1   : > { %v358_v55 = vpop.permute.xlu1 %357 }
  0xbe   : > { %v1500_v26 = vpop.f32.mrf.mxu0 }
  0xbf   : > { %v1502_v27 = vpop.f32.mrf.mxu1 }
  0xc6   : > { %v316_v30 = vpop.f32.mrf.mxu0 }
  0xc7   : > { %v1510_v31 = vpop.f32.mrf.mxu1  ;;  %v351_v41 = vpack.c.bf16 %v316_v30, %v1500_v26 }
  0xc8   : > { %v352_v42 = vpack.c.bf16 %v1510_v31, %v1502_v27 }
  0xce   : > { %v319_v32 = vpop.f32.mrf.mxu0 }
  0xcf   : > { %v338_v33 = vpop.f32.mrf.mxu1 }
  0xd6   : > { %v321_v36 = vpop.f32.mrf.mxu0 }
  0xd7   : > { %v340_v37 = vpop.f32.mrf.mxu1  ;;  %v353_v38 = vpack.c.bf16 %v321_v36, %v319_v32 }
  0xd8   : > { %v354_v40 = vpack.c.bf16 %v340_v37, %v338_v33 }
  0xd9   : > { %398 = vmatpush.bf16.msra.mxu2 %v353_v38 }
  0xda   : > { %417 = vmatpush.bf16.msra.mxu3 %v354_v40 }
  0xdd   : > { %399 = vmatpush.bf16.msra.mxu2 %v351_v41 }
  0xde   : > { %418 = vmatpush.bf16.msra.mxu3 %v352_v42 }
  0xe0   : > { %1078 = vmatmul.msk.bf16.vlgmr.msra.gmra.mxu2 %vm385_vm1, %v1122_v43 }
  0xe1   : > { %1080 = vmatmul.msk.bf16.vlgmr.msra.gmra.mxu3 %vm385_vm1, %v1122_v43 }
  0xf0   : > { %1079 = vmatmul.msk.bf16.gmra.mxu2 %vm385_vm1, %v1123_v44 }
  0xf1   : > { %1081 = vmatmul.msk.bf16.gmra.mxu3 %vm385_vm1, %v1123_v44 }
 0x163   : > { %v401_v45 = vpop.f32.mrf.mxu2 }
 0x164   : > { %v420_v46 = vpop.f32.mrf.mxu3  ;;  %v402_v63 = vadd.f32 %v401_v45, %v358_v55 }
 0x165   : > { %v421_v2 = vadd.f32 %v420_v46, %v358_v55 }
 0x166   : > { %v430_v9 = vmax.f32 %v402_v63, 0.0 }
 0x167   : > { %v431_v11 = vmax.f32 %v421_v2, 0.0 }
 0x168   : > { %v438_v15 = vadd.f32 %v430_v9, %v1500_v26 }
 0x169   : > { %v439_v16 = vadd.f32 %v431_v11, %v1502_v27 }
 0x16b   : > { %v403_v47 = vpop.f32.mrf.mxu2 }
 0x16c   : > { %v422_v48 = vpop.f32.mrf.mxu3  ;;  %v404_v58 = vadd.f32 %v403_v47, %v363_v50  ;;  %v593_v47 = vpop.permute.xlu2 %592 }
 0x16d   : > { %v423_v61 = vadd.f32 %v422_v48, %v363_v50 }
 0x16e   : > { %v432_v5 = vmax.f32 %v404_v58, 0.0 }
 0x16f   : > { %v433_v7 = vmax.f32 %v423_v61, 0.0 }
 0x170   : > { %v440_v13 = vadd.f32 %v432_v5, %v316_v30 }
 0x171   : > { %v441_v14 = vadd.f32 %v433_v7, %v1510_v31 }
 0x173   : > { %v406_v51 = vpop.f32.mrf.mxu2 }
 0x174   : > { %v425_v52 = vpop.f32.mrf.mxu3  ;;  %v407_v54 = vadd.f32 %v406_v51, %v368_v53 }
 0x175   : > { %v426_v56 = vadd.f32 %v425_v52, %v368_v53  ;;  %v597_v53 = vpop.permute.xlu2 %596 }
 0x176   : > { %v434_v0 = vmax.f32 %v407_v54, 0.0  ;;  %v1362_v54 = vmov 3  }
 0x177   : > { %v435_v3 = vmax.f32 %v426_v56, 0.0  ;;  %1204 = vset.pattern.permute.xlu1 %v1362_v54  ;;  %1206 = vset.pattern.permute.xlu0 %v1362_v54 }
 0x178   : > { %v442_v10 = vadd.f32 %v434_v0, %v319_v32  ;;  %653 = vperm.xlu1 %1204, %v1520_v35   ;;  %645 = vperm.xlu0 %1206, %v1507_v28  }
 0x179   : > { %v443_v12 = vadd.f32 %v435_v3, %v338_v33  ;;  %1205 = vset.pattern.permute.xlu2 %v1362_v54  ;;  %v617_v3 = vpop.permute.xlu0 %616 }
 0x17a   : > { %649 = vperm.xlu2 %1205, %v1527_v39  }
 0x17b   : > { %v408_v57 = vpop.f32.mrf.mxu2 }
 0x17c   : > { %v409_v59 = vadd.f32 %v408_v57, %v373_v49  ;;  %v427_v60 = vpop.f32.mrf.mxu3 }
 0x17d   : > { %v428_v62 = vadd.f32 %v427_v60, %v373_v49  ;;  %v621_v60 = vpop.permute.xlu1 %620 }
 0x17e   : > { %v436_v1 = vmax.f32 %v409_v59, 0.0 }
 0x17f   : > { %v437_v4 = vmax.f32 %v428_v62, 0.0 }
 0x180   : > { %v444_v6 = vadd.f32 %v436_v1, %v321_v36  ;;  %641 = vperm.xlu1 %1204, %v1515_v34  }
 0x181   : > { %v445_v8 = vadd.f32 %v437_v4, %v340_v37  ;;  %v585_v4 = vpop.permute.xlu2 %584 }
 0x182   : > { %461 = vmatpush.msrb.mxu2 %v444_v6 }
 0x183   : > { %481 = vmatpush.msrb.mxu3 %v445_v8 }
 0x184   : > { %462 = vmatpush.msrb.mxu2 %v442_v10 }
 0x185   : > { %482 = vmatpush.msrb.mxu3 %v443_v12 }
 0x186   : > { %463 = vmatpush.msrb.mxu2 %v440_v13 }
 0x187   : > { %483 = vmatpush.msrb.mxu3 %v441_v14 }
 0x188   : > { %464 = vmatpush.msrb.mxu2 %v438_v15 }
 0x189   : > { %484 = vmatpush.msrb.mxu3 %v439_v16  ;;  %1082 = vmatmul.msk.f32.vlgmr.msrb.gmra.mxu2 %vm385_vm1, %v1359_v17 }
 0x18a   : > { %1083 = vmatmul.msk.f32.vlgmr.msrb.gmra.mxu3 %vm385_vm1, %v1359_v17 }
 0x20c   : > { %v466_v20 = vpop.f32.mrf.mxu2 }
 0x20d   : > { %v489_v21 = vmul.f32 0.03125, %v466_v20  ;;  %v486_v22 = vpop.f32.mrf.mxu3 }
 0x20e   : > { %v490_v23 = vmul.f32 0.03125, %v486_v22 }
 0x20f   : > { %v491_v24 = vperm.slane %v489_v21, 0 }
 0x210   : > { %v492_v25 = vperm.slane %v490_v23, 0 }
 0x211   : > { %v1556_v26 = vsub.f32 %v444_v6, %v491_v24  ;;  %v1558_v27 = vsub.f32 %v442_v10, %v491_v24  ;;  %v1567_v32 = vsub.f32 %v440_v13, %v491_v24  ;;  %v1575_v38 = vsub.f32 %v438_v15, %v491_v24  ;;  %v589_v10 = vpop.permute.xlu1 %588 }
 0x212   : > { %v1561_v29 = vsub.f32 %v445_v8, %v492_v25  ;;  %v1563_v30 = vsub.f32 %v443_v12, %v492_v25  ;;  %v1571_v36 = vsub.f32 %v441_v14, %v492_v25  ;;  %v1579_v41 = vsub.f32 %v439_v16, %v492_v25 }
 0x213   : > { %v507_v31 = vmul.f32 %v1556_v26, %v1556_v26  ;;  %v505_v37 = vmul.f32 %v1558_v27, %v1558_v27  ;;  %v503_v42 = vmul.f32 %v1567_v32, %v1567_v32  ;;  %v501_v44 = vmul.f32 %v1575_v38, %v1575_v38 }
 0x214   : > { %v508_v33 = vmul.f32 %v1561_v29, %v1561_v29  ;;  %v506_v40 = vmul.f32 %v1563_v30, %v1563_v30  ;;  %v504_v43 = vmul.f32 %v1571_v36, %v1571_v36  ;;  %v502_v45 = vmul.f32 %v1579_v41, %v1579_v41 }
 0x215   : > { %521 = vmatpush.msrb.mxu0 %v507_v31  ;;  %v609_v31 = vpop.permute.xlu2 %608 }
 0x216   : > { %541 = vmatpush.msrb.mxu1 %v508_v33 }
 0x217   : > { %522 = vmatpush.msrb.mxu0 %v505_v37 }
 0x218   : > { %542 = vmatpush.msrb.mxu1 %v506_v40 }
 0x219   : > { %523 = vmatpush.msrb.mxu0 %v503_v42 }
 0x21a   : > { %543 = vmatpush.msrb.mxu1 %v504_v43 }
 0x21b   : > { %524 = vmatpush.msrb.mxu0 %v501_v44 }
 0x21c   : > { %544 = vmatpush.msrb.mxu1 %v502_v45  ;;  %1084 = vmatmul.msk.f32.vlgmr.msrb.gmra.mxu0 %vm385_vm1, %v1359_v17 }
 0x21d   : > { %1085 = vmatmul.msk.f32.vlgmr.msrb.gmra.mxu1 %vm385_vm1, %v1359_v17 }
 0x299   : > { %v526_v46 = vpop.f32.mrf.mxu0 }
 0x29a   : > { %v549_v48 = vmul.f32 0.03125, %v526_v46  ;;  %v546_v49 = vpop.f32.mrf.mxu1  ;;  %v1124_v46 = vld [vmem:[%s1688_s2 + $0x10] sm:$0xff] }
 0x29b   : > { %v550_v50 = vmul.f32 0.03125, %v546_v49 }
 0x29c   : > { %v551_v51 = vadd.f32 1e-05, %v549_v48 }
 0x29d   : > { %v552_v52 = vadd.f32 1e-05, %v550_v50 }
 0x29e   : > { %1213 = vrsqrt.f32 %v551_v51  ;;  %vm559_vm4 = vweird.f32 %v551_v51 }
 0x29f   : > { %1215 = vrsqrt.f32 %v552_v52  ;;  %vm569_vm6 = vweird.f32 %v552_v52 }
 0x2a4   : > { %v1214_v55 = vpop.eup %1213 }
 0x2a5   : > { %v1216_v56 = vpop.eup %1215  ;;  %v554_v57 = vmul.f32 %v1214_v55, %v551_v51  ;;  %vm560_vm2 = vweird.f32 %v1214_v55 }
 0x2a6   : > { %v564_v58 = vmul.f32 %v1216_v56, %v552_v52  ;;  %vm570_vm3 = vweird.f32 %v1216_v56  ;;  %vm561_vm5 = vmor %vm559_vm4, %vm560_vm2  ;;  %v654_v52 = vpop.permute.xlu1 %653 }
 0x2a7   : > { %v555_v59 = vmul.f32 %v1214_v55, %v554_v57  ;;  %vm571_vm7 = vmor %vm569_vm6, %vm570_vm3 }
 0x2a8   : > { %v565_v61 = vmul.f32 %v1216_v56, %v564_v58 }
 0x2a9   : > { %v556_v62 = vmul.f32 0.5, %v555_v59 }
 0x2aa   : > { %v566_v63 = vmul.f32 0.5, %v565_v61 }
 0x2ab   : > { %v557_v0 = vsub.f32 1.5, %v556_v62 }
 0x2ac   : > { %v567_v1 = vsub.f32 1.5, %v566_v63 }
 0x2ad   : > { %v558_v2 = vmul.f32 %v1214_v55, %v557_v0 }
 0x2ae   : > { %v568_v5 = vmul.f32 %v1216_v56, %v567_v1  ;;  %v642_v58 = vpop.permute.xlu1 %641 }
 0x2af   : > { %v562_v6 = vsel %vm561_vm5, %v1214_v55, %v558_v2  ;;  %v650_v55 = vpop.permute.xlu2 %649 }
 0x2b0   : > { %v573_v7 = vperm.slane %v562_v6, 0  ;;  %v572_v8 = vsel %vm571_vm7, %v1216_v56, %v568_v5 }
 0x2b1   : > { %v574_v9 = vperm.slane %v572_v8, 0 }
 0x2b2   : > { %v579_v11 = vmul.f32 %v573_v7, %v1558_v27  ;;  %v581_v12 = vmul.f32 %v573_v7, %v1556_v26  ;;  %v575_v13 = vmul.f32 %v573_v7, %v1575_v38  ;;  %v577_v14 = vmul.f32 %v573_v7, %v1567_v32 }
 0x2b3   : > { %v580_v15 = vmul.f32 %v574_v9, %v1563_v30  ;;  %v582_v16 = vmul.f32 %v574_v9, %v1561_v29  ;;  %v576_v18 = vmul.f32 %v574_v9, %v1579_v41  ;;  %v578_v19 = vmul.f32 %v574_v9, %v1571_v36  ;;  %v613_v30 = vpop.permute.xlu0 %612 }
 0x2b4   : > { %v603_v20 = vmul.f32 %v593_v47, %v579_v11  ;;  %v605_v21 = vmul.f32 %v597_v53, %v581_v12  ;;  %v599_v22 = vmul.f32 %v585_v4, %v575_v13  ;;  %v601_v23 = vmul.f32 %v589_v10, %v577_v14 }
 0x2b5   : > { %v604_v24 = vmul.f32 %v593_v47, %v580_v15  ;;  %v606_v25 = vmul.f32 %v597_v53, %v582_v16  ;;  %v600_v27 = vmul.f32 %v585_v4, %v576_v18  ;;  %v602_v26 = vmul.f32 %v589_v10, %v578_v19  ;;  %v1125_v47 = vld [vmem:[%s1688_s2 + $0x18] sm:$0xff] }
 0x2b6   : > { %v629_v33 = vadd.f32 %v621_v60, %v605_v21  ;;  %v627_v37 = vadd.f32 %v617_v3, %v603_v20  ;;  %v625_v29 = vadd.f32 %v613_v30, %v601_v23  ;;  %v623_v42 = vadd.f32 %v609_v31, %v599_v22 }
 0x2b7   : > { %v630_v32 = vadd.f32 %v621_v60, %v606_v25  ;;  %v628_v38 = vadd.f32 %v617_v3, %v604_v24  ;;  %v626_v43 = vadd.f32 %v613_v30, %v602_v26  ;;  %v624_v36 = vadd.f32 %v609_v31, %v600_v27 }
 0x2b8   : > { %v638_v40 = vpack.c.bf16 %v629_v33, %v627_v37  ;;  %v636_v44 = vpack.c.bf16 %v625_v29, %v623_v42  ;;  %v1363_v21 = vmov 4   ;;  %v1364_v22 = vmov 5  }
 0x2b9   : > { %v639_v41 = vpack.c.bf16 %v630_v32, %v628_v38  ;;  %v637_v45 = vpack.c.bf16 %v626_v43, %v624_v36  ;;  %1208 = vset.pattern.permute.xlu1 %v1363_v21  ;;  %1209 = vset.pattern.permute.xlu0 %v1363_v21 }
 0x2ba   : > { %678 = vmatpush.bf16.msra.mxu2 %v638_v40  ;;  %865 = vperm.xlu1 %1208, %v1507_v28  }
 0x2bb   : > { %697 = vmatpush.bf16.msra.mxu3 %v639_v41  ;;  %v646_v56 = vpop.permute.xlu0 %645  ;;  %873 = vperm.xlu0 %1209, %v1520_v35  }
 0x2bc   : > { %1207 = vset.pattern.permute.xlu2 %v1363_v21 }
 0x2bd   : > { %861 = vperm.xlu2 %1207, %v1515_v34  }
 0x2be   : > { %679 = vmatpush.bf16.msra.mxu2 %v636_v44 }
 0x2bf   : > { %698 = vmatpush.bf16.msra.mxu3 %v637_v45 }
 0x2c1   : > { %1098 = vmatmul.msk.bf16.vlgmr.msra.gmra.mxu2 %vm385_vm1, %v1124_v46 }
 0x2c2   : > { %1100 = vmatmul.msk.bf16.vlgmr.msra.gmra.mxu3 %vm385_vm1, %v1124_v46  ;;  %1210 = vset.pattern.permute.xlu1 %v1364_v22 }
 0x2c3   : > { %1212 = vset.pattern.permute.xlu0 %v1364_v22  ;;  %885 = vperm.xlu1 %1210, %v1515_v34  }
 0x2c5   : > { %869 = vperm.xlu2 %1207, %v1527_v39  }
 0x2cb   : > { %893 = vperm.xlu1 %1210, %v1527_v39  }
 0x2cd   : > { %1211 = vset.pattern.permute.xlu2 %v1364_v22 }
 0x2ce   : > { %889 = vperm.xlu2 %1211, %v1507_v28  }
 0x2d1   : > { %1099 = vmatmul.msk.bf16.gmra.mxu2 %vm385_vm1, %v1125_v47 }
 0x2d2   : > { %1101 = vmatmul.msk.bf16.gmra.mxu3 %vm385_vm1, %v1125_v47 }
 0x2d6   : > { %897 = vperm.xlu2 %1211, %v1520_v35  }
 0x317   : > { %v862_v47 = vpop.permute.xlu2 %861 }
 0x344   : > { %v681_v48 = vpop.f32.mrf.mxu2 }
 0x345   : > { %v700_v49 = vpop.f32.mrf.mxu3  ;;  %v682_v2 = vadd.f32 %v681_v48, %v642_v58 }
 0x346   : > { %v701_v5 = vadd.f32 %v700_v49, %v642_v58 }
 0x347   : > { %v710_v12 = vmax.f32 %v682_v2, 0.0 }
 0x348   : > { %v711_v14 = vmax.f32 %v701_v5, 0.0 }
 0x349   : > { %v718_v19 = vadd.f32 %v710_v12, %v623_v42 }
 0x34a   : > { %v719_v20 = vadd.f32 %v711_v14, %v624_v36 }
 0x34c   : > { %v683_v50 = vpop.f32.mrf.mxu2 }
 0x34d   : > { %v702_v51 = vpop.f32.mrf.mxu3  ;;  %v684_v61 = vadd.f32 %v683_v50, %v646_v56 }
 0x34e   : > { %v703_v0 = vadd.f32 %v702_v51, %v646_v56  ;;  %v866_v56 = vpop.permute.xlu1 %865 }
 0x34f   : > { %v712_v8 = vmax.f32 %v684_v61, 0.0 }
 0x350   : > { %v713_v10 = vmax.f32 %v703_v0, 0.0 }
 0x351   : > { %v720_v16 = vadd.f32 %v712_v8, %v625_v29 }
 0x352   : > { %v721_v18 = vadd.f32 %v713_v10, %v626_v43 }
 0x354   : > { %v686_v53 = vpop.f32.mrf.mxu2 }
 0x355   : > { %v705_v54 = vpop.f32.mrf.mxu3  ;;  %v687_v57 = vadd.f32 %v686_v53, %v650_v55  ;;  %v870_v53 = vpop.permute.xlu2 %869 }
 0x356   : > { %v706_v59 = vadd.f32 %v705_v54, %v650_v55 }
 0x357   : > { %v714_v3 = vmax.f32 %v687_v57, 0.0 }
 0x358   : > { %v715_v6 = vmax.f32 %v706_v59, 0.0 }
 0x359   : > { %v722_v13 = vadd.f32 %v714_v3, %v627_v37  ;;  %v886_v3 = vpop.permute.xlu1 %885 }
 0x35a   : > { %v723_v15 = vadd.f32 %v715_v6, %v628_v38 }
 0x35c   : > { %v688_v60 = vpop.f32.mrf.mxu2 }
 0x35d   : > { %v689_v62 = vadd.f32 %v688_v60, %v654_v52  ;;  %v707_v63 = vpop.f32.mrf.mxu3  ;;  %v890_v0 = vpop.permute.xlu2 %889 }
 0x35e   : > { %v708_v1 = vadd.f32 %v707_v63, %v654_v52 }
 0x35f   : > { %v716_v4 = vmax.f32 %v689_v62, 0.0 }
 0x360   : > { %v717_v7 = vmax.f32 %v708_v1, 0.0 }
 0x361   : > { %v724_v9 = vadd.f32 %v716_v4, %v629_v33 }
 0x362   : > { %v725_v11 = vadd.f32 %v717_v7, %v630_v32  ;;  %v874_v7 = vpop.permute.xlu0 %873 }
 0x363   : > { %738 = vmatpush.msra.mxu0 %v724_v9 }
 0x364   : > { %758 = vmatpush.msra.mxu1 %v725_v11 }
 0x365   : > { %739 = vmatpush.msra.mxu0 %v722_v13 }
 0x366   : > { %759 = vmatpush.msra.mxu1 %v723_v15 }
 0x367   : > { %740 = vmatpush.msra.mxu0 %v720_v16 }
 0x368   : > { %760 = vmatpush.msra.mxu1 %v721_v18 }
 0x369   : > { %741 = vmatpush.msra.mxu0 %v718_v19 }
 0x36a   : > { %761 = vmatpush.msra.mxu1 %v719_v20  ;;  %1102 = vmatmul.msk.f32.vlgmr.msra.gmra.mxu0 %vm385_vm1, %v1359_v17 }
 0x36b   : > { %1103 = vmatmul.msk.f32.vlgmr.msra.gmra.mxu1 %vm385_vm1, %v1359_v17 }
 0x3e7   : > { %v743_v23 = vpop.f32.mrf.mxu0 }
 0x3e8   : > { %v766_v24 = vmul.f32 0.03125, %v743_v23  ;;  %v763_v25 = vpop.f32.mrf.mxu1 }
 0x3e9   : > { %v767_v27 = vmul.f32 0.03125, %v763_v25 }
 0x3ea   : > { %v768_v26 = vperm.slane %v766_v24, 0 }
 0x3eb   : > { %v769_v31 = vperm.slane %v767_v27, 0 }
 0x3ec   : > { %v1626_v33 = vsub.f32 %v724_v9, %v768_v26  ;;  %v1628_v37 = vsub.f32 %v722_v13, %v768_v26  ;;  %v772_v30 = vsub.f32 %v720_v16, %v768_v26  ;;  %v770_v42 = vsub.f32 %v718_v19, %v768_v26 }
 0x3ed   : > { %v1630_v32 = vsub.f32 %v725_v11, %v769_v31  ;;  %v1632_v38 = vsub.f32 %v723_v15, %v769_v31  ;;  %v773_v29 = vsub.f32 %v721_v18, %v769_v31  ;;  %v771_v43 = vsub.f32 %v719_v20, %v769_v31 }
 0x3ee   : > { %v784_v34 = vmul.f32 %v1626_v33, %v1626_v33  ;;  %v782_v39 = vmul.f32 %v1628_v37, %v1628_v37  ;;  %v780_v28 = vmul.f32 %v772_v30, %v772_v30  ;;  %v778_v44 = vmul.f32 %v770_v42, %v770_v42 }
 0x3ef   : > { %v785_v40 = vmul.f32 %v1630_v32, %v1630_v32  ;;  %v783_v41 = vmul.f32 %v1632_v38, %v1632_v38  ;;  %v781_v36 = vmul.f32 %v773_v29, %v773_v29  ;;  %v779_v45 = vmul.f32 %v771_v43, %v771_v43 }
 0x3f0   : > { %798 = vmatpush.msrb.mxu0 %v784_v34 }
 0x3f1   : > { %818 = vmatpush.msrb.mxu1 %v785_v40 }
 0x3f2   : > { %799 = vmatpush.msrb.mxu0 %v782_v39 }
 0x3f3   : > { %819 = vmatpush.msrb.mxu1 %v783_v41 }
 0x3f4   : > { %800 = vmatpush.msrb.mxu0 %v780_v28 }
 0x3f5   : > { %820 = vmatpush.msrb.mxu1 %v781_v36 }
 0x3f6   : > { %801 = vmatpush.msrb.mxu0 %v778_v44 }
 0x3f7   : > { %821 = vmatpush.msrb.mxu1 %v779_v45  ;;  %1104 = vmatmul.msk.f32.vlgmr.msrb.gmra.mxu0 %vm385_vm1, %v1359_v17 }
 0x3f8   : > { %1105 = vmatmul.msk.f32.vlgmr.msrb.gmra.mxu1 %vm385_vm1, %v1359_v17 }
 0x474   : > { %v803_v46 = vpop.f32.mrf.mxu0 }
 0x475   : > { %v826_v48 = vmul.f32 0.03125, %v803_v46  ;;  %v823_v49 = vpop.f32.mrf.mxu1 }
 0x476   : > { %v827_v50 = vmul.f32 0.03125, %v823_v49 }
 0x477   : > { %v828_v51 = vadd.f32 1e-05, %v826_v48 }
 0x478   : > { %v829_v52 = vadd.f32 1e-05, %v827_v50 }
 0x479   : > { %1217 = vrsqrt.f32 %v828_v51  ;;  %vm836_vm10 = vweird.f32 %v828_v51 }
 0x47a   : > { %1219 = vrsqrt.f32 %v829_v52  ;;  %vm846_vm12 = vweird.f32 %v829_v52 }
 0x47f   : > { %v1218_v54 = vpop.eup %1217 }
 0x480   : > { %v1220_v35 = vpop.eup %1219  ;;  %v831_v55 = vmul.f32 %v1218_v54, %v828_v51  ;;  %vm837_vm8 = vweird.f32 %v1218_v54 }
 0x481   : > { %v841_v57 = vmul.f32 %v1220_v35, %v829_v52  ;;  %vm847_vm9 = vweird.f32 %v1220_v35  ;;  %vm838_vm11 = vmor %vm836_vm10, %vm837_vm8 }
 0x482   : > { %v832_v58 = vmul.f32 %v1218_v54, %v831_v55  ;;  %vm848_vm13 = vmor %vm846_vm12, %vm847_vm9 }
 0x483   : > { %v842_v59 = vmul.f32 %v1220_v35, %v841_v57 }
 0x484   : > { %v833_v60 = vmul.f32 0.5, %v832_v58 }
 0x485   : > { %v843_v61 = vmul.f32 0.5, %v842_v59 }
 0x486   : > { %v834_v17 = vsub.f32 1.5, %v833_v60 }
 0x487   : > { %v844_v62 = vsub.f32 1.5, %v843_v61 }
 0x488   : > { %v835_v63 = vmul.f32 %v1218_v54, %v834_v17 }
 0x489   : > { %v845_v1 = vmul.f32 %v1220_v35, %v844_v62 }
 0x48a   : > { %v839_v2 = vsel %vm838_vm11, %v1218_v54, %v835_v63 }
 0x48b   : > { %v850_v4 = vperm.slane %v839_v2, 0  ;;  %v849_v5 = vsel %vm848_vm13, %v1220_v35, %v845_v1 }
 0x48c   : > { %v851_v6 = vperm.slane %v849_v5, 0 }
 0x48d   : > { %v852_v8 = vmul.f32 %v850_v4, %v770_v42  ;;  %v856_v9 = vmul.f32 %v850_v4, %v1628_v37  ;;  %v854_v10 = vmul.f32 %v850_v4, %v772_v30  ;;  %v858_v11 = vmul.f32 %v850_v4, %v1626_v33  ;;  %v898_v33 = vpop.permute.xlu2 %897 }
 0x48e   : > { %v853_v12 = vmul.f32 %v851_v6, %v771_v43  ;;  %v857_v13 = vmul.f32 %v851_v6, %v1632_v38  ;;  %v855_v14 = vmul.f32 %v851_v6, %v773_v29  ;;  %v859_v15 = vmul.f32 %v851_v6, %v1630_v32  ;;  %v894_v38 = vpop.permute.xlu1 %893 }
 0x48f   : > { %v876_v16 = vmul.f32 %v862_v47, %v852_v8  ;;  %v878_v18 = vmul.f32 %v866_v56, %v854_v10  ;;  %v882_v19 = vmul.f32 %v874_v7, %v858_v11  ;;  %v880_v23 = vmul.f32 %v870_v53, %v856_v9 }
 0x490   : > { %v877_v20 = vmul.f32 %v862_v47, %v853_v12  ;;  %v879_v21 = vmul.f32 %v866_v56, %v855_v14  ;;  %v883_v22 = vmul.f32 %v874_v7, %v859_v15  ;;  %v881_v27 = vmul.f32 %v870_v53, %v857_v13 }
 0x491   : > { %v902_v24 = vadd.f32 %v890_v0, %v878_v18  ;;  %v900_v25 = vadd.f32 %v886_v3, %v876_v16  ;;  %v906_v37 = vadd.f32 %v898_v33, %v882_v19  ;;  %v904_v34 = vadd.f32 %v894_v38, %v880_v23 }
 0x492   : > { %v903_v26 = vadd.f32 %v890_v0, %v879_v21  ;;  %v901_v31 = vadd.f32 %v886_v3, %v877_v20  ;;  %v907_v32 = vadd.f32 %v898_v33, %v883_v22  ;;  %v905_v30 = vadd.f32 %v894_v38, %v881_v27 }
 0x493   : > { %910 = vst [vmem:[%s234_s28 + $0x10] sm:$0xff] %v902_v24 }
 0x494   : > { %911 = vst [vmem:[%s234_s28 + $0x18] sm:$0xff] %v903_v26 }
 0x495   : > { %908 = vst [vmem:[%s234_s28] sm:$0xff] %v900_v25 }
 0x496   : > { %909 = vst [vmem:[%s234_s28 + $0x8] sm:$0xff] %v901_v31 }
 0x497   : > { %914 = vst [vmem:[%s234_s28 + $0x30] sm:$0xff] %v906_v37 }
 0x498   : > { %915 = vst [vmem:[%s234_s28 + $0x38] sm:$0xff] %v907_v32 }
 0x499   : > { %912 = vst [vmem:[%s234_s28 + $0x20] sm:$0xff] %v904_v34 }
 0x49a   : > { %913 = vst [vmem:[%s234_s28 + $0x28] sm:$0xff] %v905_v30 }
 0x49b   : > { %1308 = shalt.err (!%p1305_p10)
}
 0x49c   : > { %s1365_s20 = smov 256   ;;  %s1366_s5 = smov 16  }
 0x49d   : > { %1133 = dma.vmem_to_hbm [thread:$0]  (%p1458_p5), %s930_s19, 1024, %s932_s6, %s917_s24, %s1365_s20, %s1365_s20, %s1366_s5  }
 0x49e PF: > { %p1150_p11 = scmp.ge.s32.totalorder %s1351_s18, 2  ;;  %s946_s21 = sand.u32 1, %s1339_s15  }
 0x49f   : > { %s947_s26 = scalar_lea.sflag [#allocation4], %s946_s21 }
 0x4a0   : > { %p1144_p12 = pnand %p1150_p11, %p1427_p6 }
 0x4a2   : > { %p1145_p13 = pneg %p1144_p12 }
 0x4a4   : > { %1334 = dma.done.wait (%p1145_p13), %s947_s26, 1024  }
 0x4a5   : > { %1336 = vsyncadd (%p1145_p13), %s947_s26, 4294966272  ;;  %p18_p0 = scmp.ge.s32.totalorder %s1444_s29, 6   ;;  %s1696_s15 = smov %s1343_s16 }
 0x4a6   : > { %s1697_s16 = smov %s1347_s17  ;;  %s1698_s17 = smov %s1454_s8 }
 0x4a7   : > { %s1699_s18 = smov %s1444_s29  ;;  %20 = sbr.rel (!%p18_p0) target bundleno = 6 (0x6), region = 86 }
 0x4ac   :  { %953 = vsyncpa [#allocation3], 1 }
 0x4ad   :  { %955 = vsyncpa [#allocation3 + $0x1], 1 }
 0x4ae   :  { %956 = vsyncpa [#allocation6], 1 }
 0x4af   :  { %957 = vsyncpa [#allocation4], 1 }
 0x4b0   :  { %959 = vsyncpa [#allocation4 + $0x1], 1 }

</bundles_post_ra>
